<compile_context>
chip_gen: v7x
topology: tpu7x:2x2x1
jax: 0.10.0
libtpu: 0.0.40
codegen_flags: <defaults>
</compile_context>

<pallas_src>
import functools

import jax
import jax.numpy as jnp
from jax.experimental import pallas as pl
from jax.experimental.pallas import tpu as pltpu


def _round_up(x, m):
    return (x + m - 1) // m * m


# ---------------------------------------------------------------------------
# Pallas kernel: one fused conv matmul + shift-add + max-pool + fused FC heads.
# ---------------------------------------------------------------------------
def cnn_text_kernel(x_ref,        # (Nb, W, D)     compute dtype (f32 or bf16)
                    wconv_ref,    # (D, TCo_pad)   all conv taps, lane-padded
                    bconv_ref,    # (1, F_pad)     conv biases (f32)
                    wfc_ref,      # (F_pad, C_pad) both FC heads, lane-padded
                    bfc_ref,      # (1, C_pad)     FC biases (f32)
                    out_ref,      # (Nb, C_pad)    f32 logits (lane-dense store)
                    feat_ref,     # (Nb, F_pad)    f32 VMEM scratch
                    *, Ks, Co):
    Nb, W, D = x_ref.shape

    # --- one lane-dense MXU matmul for ALL conv taps of ALL kernel sizes -----
    x_flat = x_ref[...].reshape(Nb * W, D)                       # single reshape
    y = jnp.dot(x_flat, wconv_ref[...],
                preferred_element_type=jnp.float32)              # (Nb*W, TCo_pad) f32
    y = y.reshape(Nb, W, wconv_ref.shape[1])

    # 128-lane-aligned feature scratch (avoids lane-axis concat of 8-wide pieces).
    feat_ref[...] = jnp.zeros_like(feat_ref)

    off = 0
    for i, K in enumerate(Ks):
        L = W - K + 1
        # conv(K) output = shifted-slice sum over taps (pure VPU adds).
        acc = y[:, 0:L, off * Co:(off + 1) * Co]
        for k in range(1, K):
            acc = acc + y[:, k:k + L, (off + k) * Co:(off + k + 1) * Co]
        pooled = jnp.max(acc, axis=1)                            # (Nb, Co) max-over-time
        # bias + ReLU AFTER pooling (exactly equivalent, W-fold less VPU work).
        pooled = jnp.maximum(pooled + bconv_ref[:, i * Co:(i + 1) * Co], 0.0)
        feat_ref[:, i * Co:(i + 1) * Co] = pooled
        off += K

    # --- fused FC heads: one MXU matmul, one lane-dense output tile ----------
    feat = feat_ref[...].astype(wfc_ref.dtype)
    out_ref[...] = (jnp.dot(feat, wfc_ref[...],
                            preferred_element_type=jnp.float32)
                    + bfc_ref[...]).astype(out_ref.dtype)


# ---------------------------------------------------------------------------
# Wrapper: embedding lookup (glue), weight fusion/padding, batch-gridded call.
# ---------------------------------------------------------------------------
@functools.partial(jax.jit, static_argnames=("block_n", "compute_dtype"))
def cnn_text_forward(tokens, embed_tbl, conv_ws, conv_bs, wf1, bf1, wf2, bf2,
                     *, block_n=512, compute_dtype=jnp.float32):
    # Embedding lookup stays in plain JAX (gather glue).
    # TODO(synk): fuse the gather into the kernel via PrefetchScalarGridSpec +
    # pl.Element row gather to avoid one HBM round-trip of the (N, W, D) activation.
    x = jnp.take(embed_tbl, tokens, axis=0).astype(compute_dtype)    # (N, W, D)
    N, W, D = x.shape
    Ks = tuple(int(w.shape[0]) for w in conv_ws)
    Co = int(conv_ws[0].shape[2])
    C1 = int(wf1.shape[1])
    C2 = int(wf2.shape[1])

    TCo = sum(Ks) * Co                         # conv-matmul output columns
    TCo_pad = _round_up(TCo, 128)
    F = len(Ks) * Co                           # pooled feature width
    F_pad = _round_up(F, 128)
    C = C1 + C2
    C_pad = _round_up(C, 128)

    # Fuse every conv tap's (D, Co) weight along the output axis -> lane-dense operand.
    w_big = jnp.concatenate([w[k] for w in conv_ws for k in range(w.shape[0])],
                            axis=1)                                  # (D, TCo)
    w_big = jnp.pad(w_big, ((0, 0), (0, TCo_pad - TCo))).astype(compute_dtype)
    b_conv = jnp.pad(jnp.concatenate(conv_bs, axis=1),
                     ((0, 0), (0, F_pad - F))).astype(jnp.float32)   # (1, F_pad)

    # Fuse the two FC heads -> one matmul, one lane-dense output.
    w_fc = jnp.concatenate([wf1, wf2], axis=1)                       # (F, C1+C2)
    w_fc = jnp.pad(w_fc, ((0, F_pad - F), (0, C_pad - C))).astype(compute_dtype)
    b_fc = jnp.pad(jnp.concatenate([bf1, bf2], axis=1),
                   ((0, 0), (0, C_pad - C))).astype(jnp.float32)     # (1, C_pad)

    # Batch tiling.  NOTE: halve block_n for v7x (64 MiB VMEM vs 128 on v5e/v6e).
    Nb = N if N <= block_n else _round_up(block_n, 8)
    N_pad = _round_up(N, Nb)
    if N_pad != N:
        x = jnp.pad(x, ((0, N_pad - N), (0, 0), (0, 0)))
    grid = (N_pad // Nb,)

    itemsize = jnp.dtype(compute_dtype).itemsize
    vmem_est = (2 * Nb * W * D * itemsize        # x tile, double-buffered
                + 2 * D * TCo_pad * itemsize     # conv weights (resident)
                + 2 * F_pad * C_pad * itemsize   # fc weights (resident)
                + 2 * (F_pad + C_pad) * 4        # biases
                + 2 * Nb * C_pad * 4             # output tile
                + Nb * F_pad * 4                 # feat scratch
                + Nb * W * TCo_pad * 4           # conv-matmul result (f32)
                + Nb * W * D * 4)                # register/layout headroom
    vmem_limit = int(min(max(2 * vmem_est, 32 * 1024 * 1024), 64 * 1024 * 1024))

    kernel = functools.partial(cnn_text_kernel, Ks=Ks, Co=Co)
    out = pl.pallas_call(
        kernel,
        out_shape=jax.ShapeDtypeStruct((N_pad, C_pad), jnp.float32),
        grid_spec=pltpu.PrefetchScalarGridSpec(
            num_scalar_prefetch=0,
            grid=grid,
            in_specs=[
                pl.BlockSpec((Nb, W, D), lambda i: (i, 0, 0)),       # activations
                pl.BlockSpec((D, TCo_pad), lambda i: (0, 0)),        # resident weights
                pl.BlockSpec((1, F_pad), lambda i: (0, 0)),
                pl.BlockSpec((F_pad, C_pad), lambda i: (0, 0)),
                pl.BlockSpec((1, C_pad), lambda i: (0, 0)),
            ],
            out_specs=pl.BlockSpec((Nb, C_pad), lambda i: (i, 0)),
            scratch_shapes=[pltpu.VMEM((Nb, F_pad), jnp.float32)],
        ),
        compiler_params=pltpu.CompilerParams(
            dimension_semantics=("parallel",),       # shards grid across TCs on v7x
            vmem_limit_bytes=vmem_limit),
    )(x, w_big, b_conv, w_fc, b_fc)

    logits = out[:N]
    return logits[:, :C1], logits[:, C1:C1 + C2]


# ---------------------------------------------------------------------------
# Pure-JAX reference (mirrors the PyTorch forward) for a correctness check.
# ---------------------------------------------------------------------------
def cnn_text_reference(tokens, embed_tbl, conv_ws, conv_bs, wf1, bf1, wf2, bf2):
    x = jnp.take(embed_tbl, tokens, axis=0)               # (N, W, D)
    N, W, D = x.shape
    pooled = []
    for w, b in zip(conv_ws, conv_bs):                     # w: (K, D, Co)
        K, _, Co = w.shape
        L = W - K + 1
        acc = jnp.zeros((N, L, Co), jnp.float32)
        for k in range(K):
            acc = acc + jnp.einsum("nld,dc->nlc", x[:, k:k + L, :], w[k])
        acc = jax.nn.relu(acc + b[0][None, None, :])
        pooled.append(jnp.max(acc, axis=1))
    feat = jnp.concatenate(pooled, axis=1)
    return feat @ wf1 + bf1[0], feat @ wf2 + bf2[0]


if __name__ == "__main__":
    # Small, forward-consistent shapes.
    V, D = 100, 32          # embed_num, embed_dim
    N, W = 2, 16            # batch, sequence length
    Co = 8                  # kernel_num
    Ks = (3, 4, 5)          # kernel_sizes
    C1, C2 = 4, 5           # class1_num, class2_num

    key = jax.random.PRNGKey(0)
    keys = jax.random.split(key, 16)

    tokens = jax.random.randint(keys[0], (N, W), 0, V, dtype=jnp.int32)
    embed_tbl = jax.random.normal(keys[1], (V, D), jnp.float32) * 0.1

    conv_ws, conv_bs = [], []
    for i, K in enumerate(Ks):
        # torch Conv2d weight (Co, 1, K, D) -> kernel layout (K, D, Co)
        conv_ws.append(jax.random.normal(keys[2 + i], (K, D, Co), jnp.float32) * 0.1)
        conv_bs.append(jax.random.normal(keys[6 + i], (1, Co), jnp.float32) * 0.1)

    F_dim = len(Ks) * Co
    # torch Linear weight (C, F) -> kernel layout (F, C)
    wf1 = jax.random.normal(keys[10], (F_dim, C1), jnp.float32) * 0.1
    bf1 = jax.random.normal(keys[11], (1, C1), jnp.float32) * 0.1
    wf2 = jax.random.normal(keys[12], (F_dim, C2), jnp.float32) * 0.1
    bf2 = jax.random.normal(keys[13], (1, C2), jnp.float32) * 0.1

    args = (tokens, embed_tbl, tuple(conv_ws), tuple(conv_bs), wf1, bf1, wf2, bf2)
    ref1, ref2 = cnn_text_reference(tokens, embed_tbl, conv_ws, conv_bs,
                                    wf1, bf1, wf2, bf2)

    # f32 matmul-operand path: tight check against the pure-JAX reference.
    logit1, logit2 = cnn_text_forward(*args, compute_dtype=jnp.float32)
    jax.block_until_ready((logit1, logit2))
    assert logit1.shape == (N, C1) and logit2.shape == (N, C2)
    assert jnp.allclose(logit1, ref1, atol=1e-5, rtol=1e-5)
    assert jnp.allclose(logit2, ref2, atol=1e-5, rtol=1e-5)

    # bf16 matmul-operand path (f32 accumulation / f32 elementwise): looser check.
    b1, b2 = cnn_text_forward(*args, compute_dtype=jnp.bfloat16)
    jax.block_until_ready((b1, b2))
    assert jnp.allclose(b1, ref1, atol=5e-2, rtol=5e-2)
    assert jnp.allclose(b2, ref2, atol=5e-2, rtol=5e-2)

    print("KERNEL_OK")
</pallas_src>

<mosaic_0001>
module attributes {stable_mosaic.version = 11 : i64} {
  func.func @cnn_text_kernel(%arg0: i32, %arg1: memref<2x16x32xf32, #tpu.memory_space<vmem>>, %arg2: memref<32x128xf32, #tpu.memory_space<vmem>>, %arg3: memref<1x128xf32, #tpu.memory_space<vmem>>, %arg4: memref<128x128xf32, #tpu.memory_space<vmem>>, %arg5: memref<1x128xf32, #tpu.memory_space<vmem>>, %arg6: memref<2x128xf32, #tpu.memory_space<vmem>>, %arg7: memref<2x128xf32, #tpu.memory_space<vmem>>) attributes {dimension_semantics = [#tpu.dimension_semantics<parallel>], iteration_bounds = array<i64: 1>, scalar_prefetch = 0 : i64, scratch_operands = 1 : i64, tpu.core_type = #tpu.core_type<tc>, window_params = [{transform_indices = @transform_0, window_bounds = array<i64: 2, 16, 32>}, {pipeline_mode = #tpu.pipeline_mode<synchronous>, transform_indices = @transform_1, window_bounds = array<i64: 32, 128>}, {pipeline_mode = #tpu.pipeline_mode<synchronous>, transform_indices = @transform_2, window_bounds = array<i64: 1, 128>}, {pipeline_mode = #tpu.pipeline_mode<synchronous>, transform_indices = @transform_3, window_bounds = array<i64: 128, 128>}, {pipeline_mode = #tpu.pipeline_mode<synchronous>, transform_indices = @transform_4, window_bounds = array<i64: 1, 128>}, {transform_indices = @transform_5, window_bounds = array<i64: 2, 128>}]} {
    %c0 = arith.constant 0 : index
    %c0_0 = arith.constant 0 : index
    %c0_1 = arith.constant 0 : index
    %0 = vector.load %arg1[%c0, %c0_0, %c0_1] : memref<2x16x32xf32, #tpu.memory_space<vmem>>, vector<2x16x32xf32>
    %1 = vector.shape_cast %0 : vector<2x16x32xf32> to vector<32x32xf32>
    %c0_2 = arith.constant 0 : index
    %c0_3 = arith.constant 0 : index
    %2 = vector.load %arg2[%c0_2, %c0_3] : memref<32x128xf32, #tpu.memory_space<vmem>>, vector<32x128xf32>
    %cst = arith.constant dense<0.000000e+00> : vector<32x128xf32>
    %3 = tpu.matmul %1, %2, %cst {dimension_numbers = #tpu.dot_dimension_numbers<[1], [0], [0], [1], [0, 0, 1, 1], [], []>} : vector<32x32xf32>, vector<32x128xf32>, vector<32x128xf32> -> vector<32x128xf32>
    %4 = vector.shape_cast %3 : vector<32x128xf32> to vector<2x16x128xf32>
    %cst_4 = arith.constant 0.000000e+00 : f32
    %5 = vector.broadcast %cst_4 : f32 to vector<2x128xf32>
    %c0_5 = arith.constant 0 : index
    %c0_6 = arith.constant 0 : index
    %6 = vector.load %arg7[%c0_5, %c0_6] : memref<2x128xf32, #tpu.memory_space<vmem>>, vector<2x128xf32>
    tpu.vector_store %arg7[%c0_5, %c0_6], %5 {strides = array<i32>} : memref<2x128xf32, #tpu.memory_space<vmem>>, vector<2x128xf32>,
    %7 = vector.extract_strided_slice %4 {offsets = [0, 0, 0], sizes = [2, 14, 8], strides = [1, 1, 1]} : vector<2x16x128xf32> to vector<2x14x8xf32>
    %8 = vector.extract_strided_slice %4 {offsets = [0, 1, 8], sizes = [2, 14, 8], strides = [1, 1, 1]} : vector<2x16x128xf32> to vector<2x14x8xf32>
    %9 = arith.addf %7, %8 : vector<2x14x8xf32>
    %10 = vector.extract_strided_slice %4 {offsets = [0, 2, 16], sizes = [2, 14, 8], strides = [1, 1, 1]} : vector<2x16x128xf32> to vector<2x14x8xf32>
    %11 = arith.addf %9, %10 : vector<2x14x8xf32>
    %cst_7 = arith.constant dense<0xFF800000> : vector<2x8xf32>
    %12 = vector.multi_reduction <maximumf>, %11, %cst_7 [1] : vector<2x14x8xf32> to vector<2x8xf32>
    %c0_8 = arith.constant 0 : index
    %c0_9 = arith.constant 0 : index
    %13 = vector.load %arg3[%c0_8, %c0_9] : memref<1x128xf32, #tpu.memory_space<vmem>>, vector<1x8xf32>
    %14 = vector.broadcast %13 : vector<1x8xf32> to vector<2x8xf32>
    %15 = arith.addf %12, %14 : vector<2x8xf32>
    %cst_10 = arith.constant 0.000000e+00 : f32
    %16 = vector.broadcast %cst_10 : f32 to vector<2x8xf32>
    %17 = arith.maximumf %15, %16 : vector<2x8xf32>
    %c0_11 = arith.constant 0 : index
    %c0_12 = arith.constant 0 : index
    %18 = vector.load %arg7[%c0_11, %c0_12] : memref<2x128xf32, #tpu.memory_space<vmem>>, vector<2x8xf32>
    tpu.vector_store %arg7[%c0_11, %c0_12], %17 {strides = array<i32>} : memref<2x128xf32, #tpu.memory_space<vmem>>, vector<2x8xf32>,
    %19 = vector.extract_strided_slice %4 {offsets = [0, 0, 24], sizes = [2, 13, 8], strides = [1, 1, 1]} : vector<2x16x128xf32> to vector<2x13x8xf32>
    %20 = vector.extract_strided_slice %4 {offsets = [0, 1, 32], sizes = [2, 13, 8], strides = [1, 1, 1]} : vector<2x16x128xf32> to vector<2x13x8xf32>
    %21 = arith.addf %19, %20 : vector<2x13x8xf32>
    %22 = vector.extract_strided_slice %4 {offsets = [0, 2, 40], sizes = [2, 13, 8], strides = [1, 1, 1]} : vector<2x16x128xf32> to vector<2x13x8xf32>
    %23 = arith.addf %21, %22 : vector<2x13x8xf32>
    %24 = vector.extract_strided_slice %4 {offsets = [0, 3, 48], sizes = [2, 13, 8], strides = [1, 1, 1]} : vector<2x16x128xf32> to vector<2x13x8xf32>
    %25 = arith.addf %23, %24 : vector<2x13x8xf32>
    %cst_13 = arith.constant dense<0xFF800000> : vector<2x8xf32>
    %26 = vector.multi_reduction <maximumf>, %25, %cst_13 [1] : vector<2x13x8xf32> to vector<2x8xf32>
    %c0_14 = arith.constant 0 : index
    %c8 = arith.constant 8 : index
    %27 = vector.load %arg3[%c0_14, %c8] : memref<1x128xf32, #tpu.memory_space<vmem>>, vector<1x8xf32>
    %28 = vector.broadcast %27 : vector<1x8xf32> to vector<2x8xf32>
    %29 = arith.addf %26, %28 : vector<2x8xf32>
    %cst_15 = arith.constant 0.000000e+00 : f32
    %30 = vector.broadcast %cst_15 : f32 to vector<2x8xf32>
    %31 = arith.maximumf %29, %30 : vector<2x8xf32>
    %c0_16 = arith.constant 0 : index
    %c8_17 = arith.constant 8 : index
    %32 = vector.load %arg7[%c0_16, %c8_17] : memref<2x128xf32, #tpu.memory_space<vmem>>, vector<2x8xf32>
    tpu.vector_store %arg7[%c0_16, %c8_17], %31 {strides = array<i32>} : memref<2x128xf32, #tpu.memory_space<vmem>>, vector<2x8xf32>,
    %33 = vector.extract_strided_slice %4 {offsets = [0, 0, 56], sizes = [2, 12, 8], strides = [1, 1, 1]} : vector<2x16x128xf32> to vector<2x12x8xf32>
    %34 = vector.extract_strided_slice %4 {offsets = [0, 1, 64], sizes = [2, 12, 8], strides = [1, 1, 1]} : vector<2x16x128xf32> to vector<2x12x8xf32>
    %35 = arith.addf %33, %34 : vector<2x12x8xf32>
    %36 = vector.extract_strided_slice %4 {offsets = [0, 2, 72], sizes = [2, 12, 8], strides = [1, 1, 1]} : vector<2x16x128xf32> to vector<2x12x8xf32>
    %37 = arith.addf %35, %36 : vector<2x12x8xf32>
    %38 = vector.extract_strided_slice %4 {offsets = [0, 3, 80], sizes = [2, 12, 8], strides = [1, 1, 1]} : vector<2x16x128xf32> to vector<2x12x8xf32>
    %39 = arith.addf %37, %38 : vector<2x12x8xf32>
    %40 = vector.extract_strided_slice %4 {offsets = [0, 4, 88], sizes = [2, 12, 8], strides = [1, 1, 1]} : vector<2x16x128xf32> to vector<2x12x8xf32>
    %41 = arith.addf %39, %40 : vector<2x12x8xf32>
    %cst_18 = arith.constant dense<0xFF800000> : vector<2x8xf32>
    %42 = vector.multi_reduction <maximumf>, %41, %cst_18 [1] : vector<2x12x8xf32> to vector<2x8xf32>
    %c0_19 = arith.constant 0 : index
    %c16 = arith.constant 16 : index
    %43 = vector.load %arg3[%c0_19, %c16] : memref<1x128xf32, #tpu.memory_space<vmem>>, vector<1x8xf32>
    %44 = vector.broadcast %43 : vector<1x8xf32> to vector<2x8xf32>
    %45 = arith.addf %42, %44 : vector<2x8xf32>
    %cst_20 = arith.constant 0.000000e+00 : f32
    %46 = vector.broadcast %cst_20 : f32 to vector<2x8xf32>
    %47 = arith.maximumf %45, %46 : vector<2x8xf32>
    %c0_21 = arith.constant 0 : index
    %c16_22 = arith.constant 16 : index
    %48 = vector.load %arg7[%c0_21, %c16_22] : memref<2x128xf32, #tpu.memory_space<vmem>>, vector<2x8xf32>
    tpu.vector_store %arg7[%c0_21, %c16_22], %47 {strides = array<i32>} : memref<2x128xf32, #tpu.memory_space<vmem>>, vector<2x8xf32>,
    %c0_23 = arith.constant 0 : index
    %c0_24 = arith.constant 0 : index
    %49 = vector.load %arg7[%c0_23, %c0_24] : memref<2x128xf32, #tpu.memory_space<vmem>>, vector<2x128xf32>
    %c0_25 = arith.constant 0 : index
    %c0_26 = arith.constant 0 : index
    %50 = vector.load %arg4[%c0_25, %c0_26] : memref<128x128xf32, #tpu.memory_space<vmem>>, vector<128x128xf32>
    %cst_27 = arith.constant dense<0.000000e+00> : vector<2x128xf32>
    %51 = tpu.matmul %49, %50, %cst_27 {dimension_numbers = #tpu.dot_dimension_numbers<[1], [0], [0], [1], [0, 0, 1, 1], [], []>} : vector<2x128xf32>, vector<128x128xf32>, vector<2x128xf32> -> vector<2x128xf32>
    %c0_28 = arith.constant 0 : index
    %c0_29 = arith.constant 0 : index
    %52 = vector.load %arg5[%c0_28, %c0_29] : memref<1x128xf32, #tpu.memory_space<vmem>>, vector<1x128xf32>
    %53 = vector.broadcast %52 : vector<1x128xf32> to vector<2x128xf32>
    %54 = arith.addf %51, %53 : vector<2x128xf32>
    %c0_30 = arith.constant 0 : index
    %c0_31 = arith.constant 0 : index
    %55 = vector.load %arg6[%c0_30, %c0_31] : memref<2x128xf32, #tpu.memory_space<vmem>>, vector<2x128xf32>
    tpu.vector_store %arg6[%c0_30, %c0_31], %54 {strides = array<i32>} : memref<2x128xf32, #tpu.memory_space<vmem>>, vector<2x128xf32>,
    return
  }
  func.func @transform_0(%arg0: i32) -> (i32, i32, i32) {
    %c0_i32 = arith.constant 0 : i32
    %c0_i32_0 = arith.constant 0 : i32
    %c0_i32_1 = arith.constant 0 : i32
    return %arg0, %c0_i32, %c0_i32_0 : i32, i32, i32
  }
  func.func @transform_1(%arg0: i32) -> (i32, i32) {
    %c0_i32 = arith.constant 0 : i32
    %c0_i32_0 = arith.constant 0 : i32
    %c0_i32_1 = arith.constant 0 : i32
    return %c0_i32, %c0_i32_0 : i32, i32
  }
  func.func @transform_2(%arg0: i32) -> (i32, i32) {
    %c0_i32 = arith.constant 0 : i32
    %c0_i32_0 = arith.constant 0 : i32
    %c0_i32_1 = arith.constant 0 : i32
    return %c0_i32, %c0_i32_0 : i32, i32
  }
  func.func @transform_3(%arg0: i32) -> (i32, i32) {
    %c0_i32 = arith.constant 0 : i32
    %c0_i32_0 = arith.constant 0 : i32
    %c0_i32_1 = arith.constant 0 : i32
    return %c0_i32, %c0_i32_0 : i32, i32
  }
  func.func @transform_4(%arg0: i32) -> (i32, i32) {
    %c0_i32 = arith.constant 0 : i32
    %c0_i32_0 = arith.constant 0 : i32
    %c0_i32_1 = arith.constant 0 : i32
    return %c0_i32, %c0_i32_0 : i32, i32
  }
  func.func @transform_5(%arg0: i32) -> (i32, i32) {
    %c0_i32 = arith.constant 0 : i32
    %c0_i32_0 = arith.constant 0 : i32
    return %arg0, %c0_i32 : i32, i32
  }
}

</mosaic_0001>

<bundles_post_ra>
// kernel: cnn_text_forward.1
= control target key start
LH: loop header
LB: loop body
LE: loop exit
PB: predicated region body
PF: predicated region fallthrough
CT: control target
= control target key end

     0   :  { %vm28_vm0 = vcmask 261120   ;;  %vm154_vm1 = vcmask 1045504   ;;  %vm216_vm2 = vcmask 1044480   ;;  %vm131_vm3 = vcmask 1046528   ;;  %s570_s8 = smov 112   ;;  %s571_s9 = smov 104   ;;  %s766_s1 = inlined_call_operand.vmem [shape: f32[32,128], index: 1, kind: input, shape index: {}]   ;;  %s767_s0 = inlined_call_operand.vmem [shape: f32[2,16,32], index: 0, kind: input, shape index: {}]   ;;  %s768_s2 = inlined_call_operand.vmem [shape: f32[1,128], index: 2, kind: input, shape index: {}]   ;;  %s769_s3 = inlined_call_operand.vmem [shape: f32[128,128], index: 3, kind: input, shape index: {}]   ;;  %s770_s4 = inlined_call_operand.vmem [shape: f32[1,128], index: 4, kind: input, shape index: {}]   ;;  %s771_s5 = inlined_call_operand.vmem [shape: f32[2,128], index: 5, kind: output, shape index: {}]  }
   0x1   :  { %v24_v0 = vld [vmem:[%s766_s1] sm:$0xff]  ;;  %v25_v1 = vld [vmem:[%s766_s1 + $0x8] sm:$0xff]  ;;  %v26_v2 = vld [vmem:[%s766_s1 + $0x10] sm:$0xff]  ;;  %vm281_vm4 = vcmask 1043456   ;;  %s572_s10 = smov 96   ;;  %v573_v38 = vmov 0.0  }
   0x2   :  { %v527_v3 = vpack.c.bf16 %v25_v1, %v24_v0  ;;  %v27_v4 = vld [vmem:[%s766_s1 + $0x18] sm:$0xff]  ;;  %v20_v5 = vld [vmem:[%s767_s0] sm:$0xff]  ;;  %v21_v7 = vld [vmem:[%s767_s0 + $0x8] sm:$0xff]  ;;  %126 = vst [vmem:[#allocation2] sm:$0x3] %v573_v38  ;;  %s574_s13 = smov 40  }
   0x3   :  { %v531_v6 = vpack.c.bf16 %v27_v4, %v26_v2  ;;  %486 = vmatprep.mubr.msk.f32.mxu0 %vm28_vm0, %v20_v5  ;;  %v22_v8 = vld [vmem:[%s767_s0 + $0x10] sm:$0xff]  ;;  %v23_v9 = vld [vmem:[%s767_s0 + $0x18] sm:$0xff]  ;;  %s569_s0 = smov 120   ;;  %v677_v39 = vld [vmem:[%s768_s2] ss:$0 sm:$0xff]  ;;  %s575_s14 = smov 16  }
   0x4   :  { %528 = vmatprep.subr.bf16.mxu0 %v527_v3  ;;  %v576_v40 = vmov 0.0|0.0   ;;  %v347_v41 = vld [vmem:[%s769_s3] sm:$0xff]  ;;  %v348_v42 = vld [vmem:[%s769_s3 + $0x8] sm:$0xff]  ;;  %v349_v43 = vld [vmem:[%s769_s3 + $0x10] sm:$0xff]  ;;  %vm179_vm5 = vcmask 62464   ;;  %vm177_vm6 = vcmask 64512  }
   0x5   :  { %530 = vmatpush3.bf16.msra.mxu0 %v527_v3  ;;  %535 = vmatprep.subr.bf16.mxu1 %v576_v40  ;;  %v536_v44 = vpack.c.bf16 %v348_v42, %v347_v41  ;;  %v350_v45 = vld [vmem:[%s769_s3 + $0x18] sm:$0xff]  ;;  %v351_v47 = vld [vmem:[%s769_s3 + $0x20] sm:$0xff]  ;;  %v352_v48 = vld [vmem:[%s769_s3 + $0x28] sm:$0xff]  ;;  %vm241_vm7 = vcmask 258240   ;;  %vm239_vm8 = vcmask 261312   ;;  %vm306_vm9 = vcmask 519616  }
   0x6   :  { %532 = vmatprep.subr.bf16.mxu0 %v531_v6  ;;  %v539_v46 = vpack.c.bf16 %v350_v45, %v349_v43  ;;  %v542_v49 = vpack.c.bf16 %v352_v48, %v351_v47  ;;  %v353_v50 = vld [vmem:[%s769_s3 + $0x30] sm:$0xff]  ;;  %v354_v51 = vld [vmem:[%s769_s3 + $0x38] sm:$0xff]  ;;  %v355_v53 = vld [vmem:[%s769_s3 + $0x40] sm:$0xff]  ;;  %vm304_vm10 = vcmask 523712   ;;  %vm211_vm11 = vcmask 1041409  }
   0x7   :  { %537 = vmatpush3.bf16.msra.mxu1 %v536_v44  ;;  %v545_v52 = vpack.c.bf16 %v354_v51, %v353_v50  ;;  %v356_v54 = vld [vmem:[%s769_s3 + $0x48] sm:$0xff]  ;;  %vm214_vm12 = vcmask 58368   ;;  %vm577_vm13 = vmmov 0   ;;  %vm279_vm14 = vcmask 123968  }
   0x8   :  { %538 = vmatprep.subr.bf16.mxu1 %v576_v40  ;;  %v548_v55 = vpack.c.bf16 %v356_v54, %v355_v53  ;;  %524 = vmatprep.mubr.msk.f32.mxu1 %vm577_vm13, %v573_v38  ;;  %vm344_vm15 = vcmask 189568  }
   0x9   :  { %534 = vmatpush3.bf16.msra.mxu0 %v531_v6 }
   0xb   :  { %540 = vmatpush3.bf16.msra.mxu1 %v539_v46 }
   0xc   :  { %487 = vmatmul.mubr.msk.f32.vlgmr.msra.gmra.mrb[0].mxu0 %vm28_vm0, %v21_v7  ;;  %541 = vmatprep.subr.bf16.mxu1 %v576_v40 }
   0xd   :  { %489 = vmatprep.mubr.msk.f32.mxu0 %vm28_vm0, %v22_v8 }
   0xf   :  { %543 = vmatpush3.bf16.msra.mxu1 %v542_v49 }
  0x10   :  { %490 = vmatmul.mubr.msk.f32.gmra.mrb[2].mxu0 %vm28_vm0, %v23_v9  ;;  %544 = vmatprep.subr.bf16.mxu1 %v576_v40 }
  0x13   :  { %546 = vmatpush3.bf16.msra.mxu1 %v545_v52 }
  0x14   :  { %547 = vmatprep.subr.bf16.mxu1 %v576_v40 }
  0x17   :  { %549 = vmatpush3.bf16.msra.mxu1 %v548_v55 }
  0x18   :  { %550 = vmatprep.subr.bf16.mxu1 %v576_v40 }
  0xdf   :  { %v637_v10 = vpop.f32.mrb[0].mxu0 }
  0xe0   :  { %v639_v11 = vpop.f32.mrb[1].mxu0  ;;  %v133_v12 = vrot.slane %v637_v10, 1  ;;  %v156_v13 = vrot.slane %v637_v10, 2  ;;  %v218_v14 = vrot.slane %v637_v10, 3  ;;  %v283_v15 = vrot.slane %v637_v10, 4 }
  0xe1   :  { %v155_v16 = vrot.slane %v639_v11, 2  ;;  %v217_v17 = vrot.slane %v639_v11, 3  ;;  %v132_v18 = vrot.slane %v639_v11, 1  ;;  %v282_v19 = vrot.slane %v639_v11, 4 }
  0xe2   :  { %140 = vrot.lane.b32.xlu1 %v133_v12, %s569_s0 }
  0xe3   :  { %v157_v20 = vsel %vm154_vm1, %v155_v16, %v156_v13  ;;  %v219_v21 = vsel %vm216_vm2, %v217_v17, %v218_v14  ;;  %v651_v22 = vpop.f32.mrb[2].mxu0  ;;  %v134_v23 = vsel %vm131_vm3, %v132_v18, %v133_v12  ;;  %v284_v24 = vsel %vm281_vm4, %v282_v19, %v283_v15 }
  0xe4   :  { %161 = vrot.lane.b32.xlu0 %v157_v20, %s570_s8  ;;  %v656_v25 = vpop.f32.mrb[3].mxu0  ;;  %v136_v26 = vrot.slane %v651_v22, 1  ;;  %v159_v27 = vrot.slane %v651_v22, 2  ;;  %v221_v28 = vrot.slane %v651_v22, 3  ;;  %v286_v29 = vrot.slane %v651_v22, 4 }
  0xe5   :  { %v135_v30 = vrot.slane %v656_v25, 1  ;;  %v158_v31 = vrot.slane %v656_v25, 2  ;;  %v220_v32 = vrot.slane %v656_v25, 3  ;;  %v285_v33 = vrot.slane %v656_v25, 4 }
  0xe6   :  { %163 = vrot.lane.b32.xlu1 %v156_v13, %s570_s8 }
  0xe7   :  { %v137_v34 = vsel %vm131_vm3, %v135_v30, %v136_v26  ;;  %v160_v35 = vsel %vm154_vm1, %v158_v31, %v159_v27  ;;  %v222_v36 = vsel %vm216_vm2, %v220_v32, %v221_v28  ;;  %v287_v37 = vsel %vm281_vm4, %v285_v33, %v286_v29 }
  0xe8   :  { %223 = vrot.lane.b32.xlu0 %v219_v21, %s571_s9 }
  0xea   :  { %225 = vrot.lane.b32.xlu1 %v218_v14, %s571_s9 }
  0xec   :  { %144 = vrot.lane.b32.xlu0 %v136_v26, %s569_s0 }
  0xee   :  { %138 = vrot.lane.b32.xlu1 %v134_v23, %s569_s0 }
  0xf0   :  { %142 = vrot.lane.b32.xlu0 %v137_v34, %s569_s0 }
  0xf2   :  { %167 = vrot.lane.b32.xlu1 %v159_v27, %s570_s8 }
  0xf4   :  { %165 = vrot.lane.b32.xlu0 %v160_v35, %s570_s8 }
  0xf6   :  { %229 = vrot.lane.b32.xlu1 %v221_v28, %s571_s9 }
  0xf8   :  { %227 = vrot.lane.b32.xlu0 %v222_v36, %s571_s9 }
  0xfa   :  { %294 = vrot.lane.b32.xlu1 %v286_v29, %s572_s10 }
  0xfc   :  { %292 = vrot.lane.b32.xlu0 %v287_v37, %s572_s10 }
  0xfe   :  { %290 = vrot.lane.b32.xlu1 %v283_v15, %s572_s10 }
 0x100   :  { %288 = vrot.lane.b32.xlu0 %v284_v24, %s572_s10 }
 0x102   :  { %330 = vrot.lane.b32.xlu1 %v677_v39, %s574_s13 }
 0x104   :  { %265 = vrot.lane.b32.xlu0 %v677_v39, %s575_s14 }
 0x154   :  { %v141_v56 = vpop.permute.xlu1 %140 }
 0x155   :  { %v151_v61 = vadd.f32 %v637_v10, %v141_v56 }
 0x156   :  { %v162_v57 = vpop.permute.xlu0 %161 }
 0x158   :  { %v164_v58 = vpop.permute.xlu1 %163 }
 0x159   :  { %v174_v63 = vadd.f32 %v164_v58, %v151_v61 }
 0x15a   :  { %v224_v59 = vpop.permute.xlu0 %223 }
 0x15b   :  { %v180_v6 = vsel %vm179_vm5, %v174_v63, -inf }
 0x15c   :  { %v226_v60 = vpop.permute.xlu1 %225 }
 0x15d   :  { %v236_v3 = vadd.f32 %v226_v60, %v174_v63 }
 0x15e   :  { %v145_v62 = vpop.permute.xlu0 %144 }
 0x15f   :  { %v153_v4 = vadd.f32 %v651_v22, %v145_v62 }
 0x160   :  { %v139_v0 = vpop.permute.xlu1 %138 }
 0x161   :  { %v150_v1 = vadd.f32 %v139_v0, %v639_v11  ;;  %v242_v11 = vsel %vm241_vm7, %v236_v3, -inf  ;;  %v357_v0 = vld [vmem:[%s769_s3 + $0x50] sm:$0xff] }
 0x162   :  { %v143_v2 = vpop.permute.xlu0 %142 }
 0x163   :  { %v173_v5 = vadd.f32 %v162_v57, %v150_v1  ;;  %v152_v8 = vadd.f32 %v143_v2, %v656_v25  ;;  %v358_v1 = vld [vmem:[%s769_s3 + $0x58] sm:$0xff] }
 0x164   :  { %v168_v7 = vpop.permute.xlu1 %167 }
 0x165   :  { %v176_v9 = vadd.f32 %v168_v7, %v153_v4  ;;  %v178_v10 = vsel %vm177_vm6, %v173_v5, -inf  ;;  %v235_v12 = vadd.f32 %v224_v59, %v173_v5  ;;  %v551_v7 = vpack.c.bf16 %v358_v1, %v357_v0 }
 0x166   :  { %v181_v13 = vmax.f32 %v178_v10, %v180_v6  ;;  %v166_v14 = vpop.permute.xlu0 %165 }
 0x167   :  { %v175_v15 = vadd.f32 %v166_v14, %v152_v8  ;;  %v240_v16 = vsel %vm239_vm8, %v235_v12, -inf  ;;  %v189_v20 = vsel %vm179_vm5, %v176_v9, -inf  ;;  %552 = vmatpush3.bf16.msra.mxu1 %v551_v7 }
 0x168   :  { %v182_v17 = vrot.slane %v181_v13, 4  ;;  %v230_v18 = vpop.permute.xlu1 %229  ;;  %v243_v19 = vmax.f32 %v240_v16, %v242_v11  ;;  %553 = vmatprep.subr.bf16.mxu1 %v576_v40 }
 0x169   :  { %v188_v21 = vsel %vm177_vm6, %v175_v15, -inf  ;;  %v238_v22 = vadd.f32 %v230_v18, %v176_v9 }
 0x16a   :  { %v183_v23 = vmax.f32 %v181_v13, %v182_v17  ;;  %v190_v24 = vmax.f32 %v188_v21, %v189_v20  ;;  %v228_v25 = vpop.permute.xlu0 %227  ;;  %v244_v26 = vrot.slane %v243_v19, 4  ;;  %v360_v20 = vld [vmem:[%s769_s3 + $0x68] sm:$0xff] }
 0x16b   :  { %v237_v27 = vadd.f32 %v228_v25, %v175_v15  ;;  %v251_v32 = vsel %vm241_vm7, %v238_v22, -inf  ;;  %v362_v25 = vld [vmem:[%s769_s3 + $0x78] sm:$0xff] }
 0x16c   :  { %v184_v28 = vrot.slane %v183_v23, 2  ;;  %v191_v29 = vrot.slane %v190_v24, 4  ;;  %v295_v30 = vpop.permute.xlu1 %294  ;;  %v245_v31 = vmax.f32 %v243_v19, %v244_v26  ;;  %v359_v19 = vld [vmem:[%s769_s3 + $0x60] sm:$0xff] }
 0x16d   :  { %v250_v33 = vsel %vm239_vm8, %v237_v27, -inf  ;;  %v303_v34 = vadd.f32 %v295_v30, %v238_v22 }
 0x16e   :  { %v185_v35 = vmax.f32 %v183_v23, %v184_v28  ;;  %v192_v36 = vmax.f32 %v190_v24, %v191_v29  ;;  %v252_v37 = vmax.f32 %v250_v33, %v251_v32  ;;  %v293_v41 = vpop.permute.xlu0 %292  ;;  %v246_v42 = vrot.slane %v245_v31, 2 }
 0x16f   :  { %v302_v43 = vadd.f32 %v293_v41, %v237_v27  ;;  %v316_v49 = vsel %vm306_vm9, %v303_v34, -inf  ;;  %v554_v24 = vpack.c.bf16 %v360_v20, %v359_v19 }
 0x170   :  { %v193_v44 = vrot.slane %v192_v36, 2  ;;  %v253_v45 = vrot.slane %v252_v37, 4  ;;  %v291_v46 = vpop.permute.xlu1 %290  ;;  %v247_v47 = vmax.f32 %v245_v31, %v246_v42  ;;  %v186_v48 = vrot.slane %v185_v35, 1 }
 0x171   :  { %v315_v50 = vsel %vm304_vm10, %v302_v43, -inf  ;;  %v301_v51 = vadd.f32 %v291_v46, %v236_v3  ;;  %555 = vmatpush3.bf16.msra.mxu1 %v554_v24 }
 0x172   :  { %v194_v52 = vmax.f32 %v192_v36, %v193_v44  ;;  %v254_v53 = vmax.f32 %v252_v37, %v253_v45  ;;  %v317_v54 = vmax.f32 %v315_v50, %v316_v49  ;;  %v289_v55 = vpop.permute.xlu0 %288  ;;  %v248_v57 = vrot.slane %v247_v47, 1  ;;  %556 = vmatprep.subr.bf16.mxu1 %v576_v40  ;;  %v452_v49 = vld [vmem:[%s770_s4] ss:$0 sm:$0xff] }
 0x173   :  { %v300_v56 = vadd.f32 %v289_v55, %v235_v12  ;;  %v187_v61 = vmax.f32 %v185_v35, %v186_v48  ;;  %v307_v62 = vsel %vm306_vm9, %v301_v51, -inf }
 0x174   :  { %v195_v58 = vrot.slane %v194_v52, 1  ;;  %v255_v59 = vrot.slane %v254_v53, 2  ;;  %v318_v60 = vrot.slane %v317_v54, 4  ;;  %v249_v6 = vmax.f32 %v247_v47, %v248_v57  ;;  %v331_v26 = vpop.permute.xlu1 %330 }
 0x175   :  { %v305_v63 = vsel %vm304_vm10, %v300_v56, -inf  ;;  %v204_v14 = vadd.f32 %v677_v39, %v187_v61 }
 0x176   :  { %v196_v2 = vmax.f32 %v194_v52, %v195_v58  ;;  %v319_v3 = vmax.f32 %v317_v54, %v318_v60  ;;  %v308_v4 = vmax.f32 %v305_v63, %v307_v62  ;;  %v256_v5 = vmax.f32 %v254_v53, %v255_v59  ;;  %v266_v12 = vpop.permute.xlu0 %265 }
 0x177   :  { %v268_v18 = vadd.f32 %v266_v12, %v249_v6  ;;  %v206_v27 = vmax.f32 %v204_v14, 0.0 }
 0x178   :  { %v320_v8 = vrot.slane %v319_v3, 2  ;;  %v309_v9 = vrot.slane %v308_v4, 4  ;;  %v257_v10 = vrot.slane %v256_v5, 1  ;;  %v205_v13 = vadd.f32 %v677_v39, %v196_v2  ;;  %v361_v39 = vld [vmem:[%s769_s3 + $0x70] sm:$0xff]  ;;  %s578_s3 = smov 88  }
 0x179   :  { %v557_v32 = vpack.c.bf16 %v362_v25, %v361_v39  ;;  %v270_v34 = vmax.f32 %v268_v18, 0.0 }
 0x17a   :  { %v310_v11 = vmax.f32 %v308_v4, %v309_v9  ;;  %v258_v15 = vmax.f32 %v256_v5, %v257_v10  ;;  %v321_v16 = vmax.f32 %v319_v3, %v320_v8  ;;  %v207_v17 = vmax.f32 %v205_v13, 0.0 }
 0x17b   :  { %558 = vmatpush3.bf16.msra.mxu1 %v557_v32 }
 0x17c   :  { %v311_v21 = vrot.slane %v310_v11, 2  ;;  %v269_v22 = vadd.f32 %v266_v12, %v258_v15  ;;  %v322_v23 = vrot.slane %v321_v16, 1  ;;  %v210_v28 = vrot.slane %v207_v17, 7 }
 0x17e   :  { %v271_v29 = vmax.f32 %v269_v22, 0.0  ;;  %v312_v30 = vmax.f32 %v310_v11, %v311_v21  ;;  %v323_v31 = vmax.f32 %v321_v16, %v322_v23  ;;  %v212_v33 = vsel %vm211_vm11, %v210_v28, %v206_v27 }
 0x17f   :  { %215 = vst.msk [vmem:[#allocation2] sm:$0x3] %vm214_vm12, %v212_v33 }
 0x180   :  { %v274_v35 = vrot.slane %v271_v29, 7  ;;  %v313_v36 = vrot.slane %v312_v30, 1  ;;  %v334_v37 = vadd.f32 %v331_v26, %v323_v31 }
 0x182   :  { %v314_v41 = vmax.f32 %v312_v30, %v313_v36  ;;  %v336_v42 = vmax.f32 %v334_v37, 0.0  ;;  %v275_v43 = vsel %vm211_vm11, %v274_v35, %v270_v34 }
 0x183   :  { %276 = vrot.lane.b32.xlu0 %v275_v43, %s570_s8 }
 0x184   :  { %v333_v44 = vadd.f32 %v331_v26, %v314_v41  ;;  %v339_v46 = vrot.slane %v336_v42, 7 }
 0x186   :  { %v335_v45 = vmax.f32 %v333_v44, 0.0 }
 0x188   :  { %v340_v38 = vsel %vm211_vm11, %v339_v46, %v335_v45 }
 0x189   :  { %341 = vrot.lane.b32.xlu1 %v340_v38, %s578_s3 }
 0x1f5   :  { %v277_v40 = vpop.permute.xlu0 %276 }
 0x1f6   :  { %280 = vst.msk [vmem:[#allocation2] sm:$0x3] %vm279_vm14, %v277_v40 }
 0x1fb   :  { %v342_v47 = vpop.permute.xlu1 %341 }
 0x1fc   :  { %345 = vst.msk [vmem:[#allocation2] sm:$0x3] %vm344_vm15, %v342_v47 }
 0x203   :  { %v346_v48 = vld [vmem:[#allocation2] sm:$0x3] }
 0x204   :  { %525 = vmatmul.mubr.f32.vlgmr.msra.gmra.mrb[0].mxu1 %v346_v48 }
 0x2d7   :  { %v436_v50 = vpop.f32.mrb[0].mxu1 }
 0x2d8   :  { %v437_v51 = vadd.f32 %v452_v49, %v436_v50  ;;  %v526_v52 = vpop.f32.mrb[1].mxu1 }
 0x2da   :  { %440 = vst [vmem:[%s771_s5] sm:$0x3] %v437_v51 }

</bundles_post_ra>
